<compile_context>
chip_gen: v7x
topology: tpu7x:2x2x1
jax: 0.10.0
libtpu: 0.0.40
codegen_flags: <defaults>
</compile_context>

<pallas_src>
import functools

import jax
import jax.numpy as jnp
from jax import lax
from jax.experimental import pallas as pl
from jax.experimental.pallas import tpu as pltpu

EPS = 1e-5
MOMENTUM = 0.1


def _tpu_vmem_capacity_bytes():
    """Per-TensorCore VMEM capacity, with a conservative (v7x) fallback."""
    try:
        cap = int(getattr(pltpu.get_tpu_info(), "vmem_capacity_bytes", 0))
        if cap > 0:
            return cap
    except Exception:  # query unavailable (e.g. not on a TPU host)
        pass
    return 64 * 1024 * 1024


_VMEM_CAP_BYTES = _tpu_vmem_capacity_bytes()
# Scoped VMEM requested from Mosaic: generous on v5e/v6e (128 MiB physical),
# automatically tighter on v7x (64 MiB physical per TC).
_VMEM_LIMIT_BYTES = min(int(_VMEM_CAP_BYTES * 0.8), 100 * 1024 * 1024)
# Budget for one grid step's *full f32 working set* (DMA buffers + in-kernel
# f32 temporaries), leaving headroom for Mosaic's own scratch.
_WORKSET_BUDGET_BYTES = max(_VMEM_LIMIT_BYTES - 8 * 1024 * 1024, 8 * 1024 * 1024)


# --------------------------------------------------------------------------
# Kernels
# --------------------------------------------------------------------------
def _bn_fused_kernel(x_ref, w_ref, b_ref, o_ref, mean_ref, var_ref, *, inv_m, eps):
    """Single-pass BN for one channel block: full (N, bc, HW) slab in VMEM.

    x_ref/o_ref: (N, bc, HW); w_ref/b_ref: (C, 1) resident; stats: (bc, 1).
    """
    bc = mean_ref.shape[0]
    c0 = pl.program_id(0) * bc
    if bc % 8 == 0:
        c0 = pl.multiple_of(c0, 8)
    w = w_ref[pl.ds(c0, bc), :]          # (bc, 1)
    b = b_ref[pl.ds(c0, bc), :]          # (bc, 1)

    xf = x_ref[...].astype(jnp.float32)                                   # (N, bc, HW)
    # Fold the batch axis with cheap VPU adds, then one XLU lane-reduce.
    s1 = jnp.sum(jnp.sum(xf, axis=0), axis=-1, keepdims=True)             # (bc, 1)
    s2 = jnp.sum(jnp.sum(xf * xf, axis=0), axis=-1, keepdims=True)        # (bc, 1)
    mean = s1 * inv_m
    var = jnp.maximum(s2 * inv_m - mean * mean, 0.0)                      # biased

    inv_std = lax.rsqrt(var + eps)
    scale = w * inv_std                                                   # (bc, 1)
    shift = b - mean * scale                                              # (bc, 1)
    o_ref[...] = (xf * scale[None] + shift[None]).astype(o_ref.dtype)

    mean_ref[...] = mean
    var_ref[...] = var


def _bn_stats_kernel(x_ref, mean_ref, var_ref, s1_ref, s2_ref, *, inv_m):
    """Two-pass path, pass 1: accumulate sum / sum-sq over (batch, spatial) tiles."""
    n_i = pl.program_id(1)
    s_i = pl.program_id(2)

    @pl.when((n_i == 0) & (s_i == 0))
    def _():
        s1_ref[...] = jnp.zeros_like(s1_ref)
        s2_ref[...] = jnp.zeros_like(s2_ref)

    xf = x_ref[...].astype(jnp.float32)                                   # (bn, bc, bhw)
    s1_ref[...] += jnp.sum(jnp.sum(xf, axis=0), axis=-1, keepdims=True)
    s2_ref[...] += jnp.sum(jnp.sum(xf * xf, axis=0), axis=-1, keepdims=True)

    @pl.when((n_i == pl.num_programs(1) - 1) & (s_i == pl.num_programs(2) - 1))
    def _():
        mean = s1_ref[...] * inv_m
        mean_ref[...] = mean
        var_ref[...] = jnp.maximum(s2_ref[...] * inv_m - mean * mean, 0.0)


def _bn_norm_kernel(x_ref, scale_ref, shift_ref, o_ref):
    """Two-pass path, pass 2: y = x * scale + shift with resident (C,1) params."""
    bc = x_ref.shape[1]
    c0 = pl.program_id(0) * bc
    if bc % 8 == 0:
        c0 = pl.multiple_of(c0, 8)
    scale = scale_ref[pl.ds(c0, bc), :]
    shift = shift_ref[pl.ds(c0, bc), :]
    o_ref[...] = (x_ref[...].astype(jnp.float32) * scale[None]
                  + shift[None]).astype(o_ref.dtype)


# --------------------------------------------------------------------------
# Tiling plan
# --------------------------------------------------------------------------
def _legal_channel_blocks(C):
    """Divisors of C usable as the second-to-last block dim (8-aligned or full C)."""
    return sorted({d for d in range(1, C + 1) if C % d == 0 and (d % 8 == 0 or d == C)})


def _legal_spatial_blocks(HW):
    """Divisors of HW usable as the last block dim (128-aligned or full HW)."""
    blocks = {HW}
    d = 128
    while d <= HW:
        if HW % d == 0:
            blocks.add(d)
        d += 128
    return sorted(blocks)


def _largest_leq(cands, limit):
    vals = [d for d in cands if d <= limit]
    return max(vals) if vals else None


def _largest_divisor_leq(n, limit):
    for d in range(min(n, max(limit, 1)), 0, -1):
        if n % d == 0:
            return d
    return 1


def _plan(N, C, HW, itemsize, workset_budget_bytes, force_two_pass=False):
    # f32 working-set accounting per x element: 2x double-buffered input DMA +
    # 2x output DMA in the input dtype, plus ~3 full-tile f32 temporaries.
    per_elem_bytes = 4 * itemsize + 3 * 4
    budget_elems = max(workset_budget_bytes // per_elem_bytes, 1)
    cblocks = _legal_channel_blocks(C)

    if not force_two_pass:
        max_c = budget_elems // (N * HW)
        bc = _largest_leq(cblocks, max_c)
        if bc is not None:
            # Prefer >=2 channel grid steps (v7x megacore) when a legal smaller
            # block exists and each step still moves >=512 KiB of x.
            if C // bc < 2:
                smaller = [d for d in cblocks
                           if d < bc and d * N * HW * itemsize >= 512 * 1024]
                if smaller:
                    bc = max(smaller)
            return dict(fused=True, bc=bc, bn=None, bhw=None)

    # Two-pass fallback: a full per-channel slab does not fit the VMEM budget.
    bc = _largest_leq(cblocks, budget_elems // HW)   # assuming bn=1, bhw=HW
    if bc is not None:
        bhw = HW
    else:
        bc = min(cblocks)
        bhw = _largest_leq(_legal_spatial_blocks(HW), max(budget_elems // bc, 1))
        if bhw is None:
            # TODO(synk): no 128-aligned divisor of HW fits the budget; a padded
            # / masked spatial tiling would be needed. Use the full extent.
            bhw = HW
    bn = _largest_divisor_leq(N, max(budget_elems // (bc * bhw), 1))
    return dict(fused=False, bc=bc, bn=bn, bhw=bhw)


# --------------------------------------------------------------------------
# pallas_call wrappers
# --------------------------------------------------------------------------
def _batch_norm_fused(x, w, b, bc, eps):
    N, C, HW = x.shape
    kernel = functools.partial(_bn_fused_kernel, inv_m=1.0 / (N * HW), eps=eps)
    y, mean, var = pl.pallas_call(
        kernel,
        out_shape=(
            jax.ShapeDtypeStruct((N, C, HW), x.dtype),
            jax.ShapeDtypeStruct((C, 1), jnp.float32),
            jax.ShapeDtypeStruct((C, 1), jnp.float32),
        ),
        grid=(C // bc,),
        in_specs=[
            pl.BlockSpec((N, bc, HW), lambda c: (0, c, 0)),
            pl.BlockSpec((C, 1), lambda c: (0, 0)),   # resident, no per-step DMA
            pl.BlockSpec((C, 1), lambda c: (0, 0)),
        ],
        out_specs=(
            pl.BlockSpec((N, bc, HW), lambda c: (0, c, 0)),
            pl.BlockSpec((bc, 1), lambda c: (c, 0)),
            pl.BlockSpec((bc, 1), lambda c: (c, 0)),
        ),
        compiler_params=pltpu.CompilerParams(
            dimension_semantics=("parallel",),
            vmem_limit_bytes=_VMEM_LIMIT_BYTES,
        ),
    )(x, w, b)
    return y, mean[:, 0], var[:, 0]


def _batch_norm_stats(x, bc, bn, bhw):
    N, C, HW = x.shape
    kernel = functools.partial(_bn_stats_kernel, inv_m=1.0 / (N * HW))
    mean, var = pl.pallas_call(
        kernel,
        out_shape=(
            jax.ShapeDtypeStruct((C, 1), jnp.float32),
            jax.ShapeDtypeStruct((C, 1), jnp.float32),
        ),
        grid=(C // bc, N // bn, HW // bhw),
        in_specs=[pl.BlockSpec((bn, bc, bhw), lambda c, n, s: (n, c, s))],
        out_specs=(
            pl.BlockSpec((bc, 1), lambda c, n, s: (c, 0)),
            pl.BlockSpec((bc, 1), lambda c, n, s: (c, 0)),
        ),
        scratch_shapes=[pltpu.VMEM((bc, 1), jnp.float32),
                        pltpu.VMEM((bc, 1), jnp.float32)],
        compiler_params=pltpu.CompilerParams(
            dimension_semantics=("parallel", "arbitrary", "arbitrary"),
            vmem_limit_bytes=_VMEM_LIMIT_BYTES,
        ),
    )(x)
    return mean[:, 0], var[:, 0]


def _batch_norm_apply(x, scale, shift, bc, bn, bhw):
    N, C, HW = x.shape
    return pl.pallas_call(
        _bn_norm_kernel,
        out_shape=jax.ShapeDtypeStruct((N, C, HW), x.dtype),
        grid=(C // bc, N // bn, HW // bhw),
        in_specs=[
            pl.BlockSpec((bn, bc, bhw), lambda c, n, s: (n, c, s)),
            pl.BlockSpec((C, 1), lambda c, n, s: (0, 0)),   # resident
            pl.BlockSpec((C, 1), lambda c, n, s: (0, 0)),
        ],
        out_specs=pl.BlockSpec((bn, bc, bhw), lambda c, n, s: (n, c, s)),
        compiler_params=pltpu.CompilerParams(
            dimension_semantics=("parallel", "parallel", "parallel"),
            vmem_limit_bytes=_VMEM_LIMIT_BYTES,
        ),
    )(x, scale, shift)


def batch_norm_pallas(x_nchw, weight, bias, running_mean, running_var,
                      num_batches_tracked, *, momentum=MOMENTUM, eps=EPS,
                      workset_budget_bytes=_WORKSET_BUDGET_BYTES,
                      force_two_pass=False):
    """Training-mode BatchNorm forward matching MyBatchNorm.forward.

    Returns (y_nchw, new_running_mean, new_running_var, new_num_batches_tracked).
    """
    N, C, H, W = x_nchw.shape
    HW = H * W

    # Pure view — no HBM transpose of the activation.
    # TODO(synk): for lane-sparse spatial extents (HW % 128 != 0, e.g. 7x7 maps)
    # the y writeback uses masked stores; a lane-dense (C, N*HW) repack (one
    # transpose) would be faster for those layers.
    x = x_nchw.reshape(N, C, HW)
    itemsize = jnp.dtype(x_nchw.dtype).itemsize

    plan = _plan(N, C, HW, itemsize, workset_budget_bytes, force_two_pass)

    if plan["fused"]:
        w = weight.astype(jnp.float32).reshape(C, 1)
        b = bias.astype(jnp.float32).reshape(C, 1)
        y, bm, bv = _batch_norm_fused(x, w, b, plan["bc"], eps)
    else:
        bm, bv = _batch_norm_stats(x, plan["bc"], plan["bn"], plan["bhw"])
        inv_std = lax.rsqrt(bv + eps)
        scale = weight.astype(jnp.float32) * inv_std
        shift = bias.astype(jnp.float32) - bm * scale
        y = _batch_norm_apply(x, scale.reshape(C, 1), shift.reshape(C, 1),
                              plan["bc"], plan["bn"], plan["bhw"])

    y_nchw = y.reshape(N, C, H, W)
    # MyBatchNorm updates running_var with the *biased* batch variance
    # (x.var(unbiased=False)) — matched here on purpose.
    new_running_mean = running_mean * (1.0 - momentum) + bm * momentum
    new_running_var = running_var * (1.0 - momentum) + bv * momentum
    new_num_batches_tracked = num_batches_tracked + 1
    return y_nchw, new_running_mean, new_running_var, new_num_batches_tracked


if __name__ == "__main__":
    key = jax.random.PRNGKey(0)
    N, C, H, W = 2, 4, 16, 16
    x = jax.random.normal(key, (N, C, H, W), dtype=jnp.float32)

    weight = jnp.ones((C,), jnp.float32)
    bias = jnp.zeros((C,), jnp.float32)
    running_mean = jnp.zeros((C,), jnp.float32)
    running_var = jnp.ones((C,), jnp.float32)
    num_batches_tracked = jnp.asarray(0, jnp.int32)

    # Pure-JAX reference (training-mode batch norm with biased variance).
    mean_ref = jnp.mean(x, axis=(0, 2, 3), keepdims=True)
    var_ref = jnp.mean((x - mean_ref) ** 2, axis=(0, 2, 3), keepdims=True)
    y_ref = (x - mean_ref) / jnp.sqrt(var_ref + EPS)
    y_ref = y_ref * weight.reshape(1, C, 1, 1) + bias.reshape(1, C, 1, 1)
    rm_ref = running_mean * (1.0 - MOMENTUM) + mean_ref.reshape(C) * MOMENTUM
    rv_ref = running_var * (1.0 - MOMENTUM) + var_ref.reshape(C) * MOMENTUM

    # Path 1: fused single-pass kernel (default VMEM budget).
    y, rm, rv, nbt = batch_norm_pallas(
        x, weight, bias, running_mean, running_var, num_batches_tracked)
    jax.block_until_ready((y, rm, rv, nbt))
    assert jnp.allclose(y, y_ref, atol=1e-5, rtol=1e-5)
    assert jnp.allclose(rm, rm_ref, atol=1e-5, rtol=1e-5)
    assert jnp.allclose(rv, rv_ref, atol=1e-5, rtol=1e-5)
    assert int(nbt) == 1

    # Path 2: tiny artificial budget forces the two-pass fallback (batch +
    # spatial reduction grid with VMEM accumulators) — exercises the path that
    # replaces the old `return C` fallback.
    y2, rm2, rv2, nbt2 = batch_norm_pallas(
        x, weight, bias, running_mean, running_var, num_batches_tracked,
        workset_budget_bytes=16 * 1024)
    jax.block_until_ready((y2, rm2, rv2, nbt2))
    assert jnp.allclose(y2, y_ref, atol=1e-5, rtol=1e-5)
    assert jnp.allclose(rm2, rm_ref, atol=1e-5, rtol=1e-5)
    assert jnp.allclose(rv2, rv_ref, atol=1e-5, rtol=1e-5)
    assert int(nbt2) == 1

    print("KERNEL_OK")
</pallas_src>

<mosaic_0001>
module attributes {stable_mosaic.version = 11 : i64} {
  func.func @_bn_fused_kernel(%arg0: i32, %arg1: memref<2x4x256xf32, #tpu.memory_space<vmem>>, %arg2: memref<4x1xf32, #tpu.memory_space<vmem>>, %arg3: memref<4x1xf32, #tpu.memory_space<vmem>>, %arg4: memref<2x4x256xf32, #tpu.memory_space<vmem>>, %arg5: memref<4x1xf32, #tpu.memory_space<vmem>>, %arg6: memref<4x1xf32, #tpu.memory_space<vmem>>) attributes {dimension_semantics = [#tpu.dimension_semantics<parallel>], iteration_bounds = array<i64: 1>, scalar_prefetch = 0 : i64, scratch_operands = 0 : i64, tpu.core_type = #tpu.core_type<tc>, window_params = [{transform_indices = @transform_0, window_bounds = array<i64: 2, 4, 256>}, {pipeline_mode = #tpu.pipeline_mode<synchronous>, transform_indices = @transform_1, window_bounds = array<i64: 4, 1>}, {pipeline_mode = #tpu.pipeline_mode<synchronous>, transform_indices = @transform_2, window_bounds = array<i64: 4, 1>}, {transform_indices = @transform_3, window_bounds = array<i64: 2, 4, 256>}, {transform_indices = @transform_4, window_bounds = array<i64: 4, 1>}, {transform_indices = @transform_5, window_bounds = array<i64: 4, 1>}]} {
    %c4_i32 = arith.constant 4 : i32
    %0 = arith.muli %arg0, %c4_i32 : i32
    %1 = arith.index_cast %0 : i32 to index
    %c0 = arith.constant 0 : index
    %2 = vector.load %arg2[%1, %c0] : memref<4x1xf32, #tpu.memory_space<vmem>>, vector<4x1xf32>
    %3 = arith.index_cast %0 : i32 to index
    %c0_0 = arith.constant 0 : index
    %4 = vector.load %arg3[%3, %c0_0] : memref<4x1xf32, #tpu.memory_space<vmem>>, vector<4x1xf32>
    %c0_1 = arith.constant 0 : index
    %c0_2 = arith.constant 0 : index
    %c0_3 = arith.constant 0 : index
    %5 = vector.load %arg1[%c0_1, %c0_2, %c0_3] : memref<2x4x256xf32, #tpu.memory_space<vmem>>, vector<2x4x256xf32>
    %cst = arith.constant dense<0.000000e+00> : vector<4x256xf32>
    %6 = vector.multi_reduction <add>, %5, %cst [0] : vector<2x4x256xf32> to vector<4x256xf32>
    %cst_4 = arith.constant dense<0.000000e+00> : vector<4xf32>
    %7 = vector.multi_reduction <add>, %6, %cst_4 [1] : vector<4x256xf32> to vector<4xf32>
    %8 = vector.shape_cast %7 : vector<4xf32> to vector<4x1xf32>
    %9 = arith.mulf %5, %5 : vector<2x4x256xf32>
    %cst_5 = arith.constant dense<0.000000e+00> : vector<4x256xf32>
    %10 = vector.multi_reduction <add>, %9, %cst_5 [0] : vector<2x4x256xf32> to vector<4x256xf32>
    %cst_6 = arith.constant dense<0.000000e+00> : vector<4xf32>
    %11 = vector.multi_reduction <add>, %10, %cst_6 [1] : vector<4x256xf32> to vector<4xf32>
    %12 = vector.shape_cast %11 : vector<4xf32> to vector<4x1xf32>
    %cst_7 = arith.constant 0.001953125 : f32
    %13 = vector.broadcast %cst_7 : f32 to vector<4x1xf32>
    %14 = arith.mulf %8, %13 : vector<4x1xf32>
    %cst_8 = arith.constant 0.001953125 : f32
    %15 = vector.broadcast %cst_8 : f32 to vector<4x1xf32>
    %16 = arith.mulf %12, %15 : vector<4x1xf32>
    %17 = arith.mulf %14, %14 : vector<4x1xf32>
    %18 = arith.subf %16, %17 : vector<4x1xf32>
    %cst_9 = arith.constant 0.000000e+00 : f32
    %19 = vector.broadcast %cst_9 : f32 to vector<4x1xf32>
    %20 = arith.maximumf %18, %19 : vector<4x1xf32>
    %cst_10 = arith.constant 9.99999974E-6 : f32
    %21 = vector.broadcast %cst_10 : f32 to vector<4x1xf32>
    %22 = arith.addf %20, %21 : vector<4x1xf32>
    %23 = math.rsqrt %22 : vector<4x1xf32>
    %24 = arith.mulf %2, %23 : vector<4x1xf32>
    %25 = arith.mulf %14, %24 : vector<4x1xf32>
    %26 = arith.subf %4, %25 : vector<4x1xf32>
    %27 = vector.shape_cast %24 : vector<4x1xf32> to vector<1x4x1xf32>
    %28 = vector.broadcast %27 : vector<1x4x1xf32> to vector<2x4x256xf32>
    %29 = arith.mulf %5, %28 : vector<2x4x256xf32>
    %30 = vector.shape_cast %26 : vector<4x1xf32> to vector<1x4x1xf32>
    %31 = vector.broadcast %30 : vector<1x4x1xf32> to vector<2x4x256xf32>
    %32 = arith.addf %29, %31 : vector<2x4x256xf32>
    %c0_11 = arith.constant 0 : index
    %c0_12 = arith.constant 0 : index
    %c0_13 = arith.constant 0 : index
    %33 = vector.load %arg4[%c0_11, %c0_12, %c0_13] : memref<2x4x256xf32, #tpu.memory_space<vmem>>, vector<2x4x256xf32>
    tpu.vector_store %arg4[%c0_11, %c0_12, %c0_13], %32 {strides = array<i32>} : memref<2x4x256xf32, #tpu.memory_space<vmem>>, vector<2x4x256xf32>,
    %c0_14 = arith.constant 0 : index
    %c0_15 = arith.constant 0 : index
    %34 = vector.load %arg5[%c0_14, %c0_15] : memref<4x1xf32, #tpu.memory_space<vmem>>, vector<4x1xf32>
    tpu.vector_store %arg5[%c0_14, %c0_15], %14 {strides = array<i32>} : memref<4x1xf32, #tpu.memory_space<vmem>>, vector<4x1xf32>,
    %c0_16 = arith.constant 0 : index
    %c0_17 = arith.constant 0 : index
    %35 = vector.load %arg6[%c0_16, %c0_17] : memref<4x1xf32, #tpu.memory_space<vmem>>, vector<4x1xf32>
    tpu.vector_store %arg6[%c0_16, %c0_17], %20 {strides = array<i32>} : memref<4x1xf32, #tpu.memory_space<vmem>>, vector<4x1xf32>,
    return
  }
  func.func @transform_0(%arg0: i32) -> (i32, i32, i32) {
    %c0_i32 = arith.constant 0 : i32
    %c0_i32_0 = arith.constant 0 : i32
    %c0_i32_1 = arith.constant 0 : i32
    return %c0_i32, %arg0, %c0_i32_0 : i32, i32, i32
  }
  func.func @transform_1(%arg0: i32) -> (i32, i32) {
    %c0_i32 = arith.constant 0 : i32
    %c0_i32_0 = arith.constant 0 : i32
    %c0_i32_1 = arith.constant 0 : i32
    return %c0_i32, %c0_i32_0 : i32, i32
  }
  func.func @transform_2(%arg0: i32) -> (i32, i32) {
    %c0_i32 = arith.constant 0 : i32
    %c0_i32_0 = arith.constant 0 : i32
    %c0_i32_1 = arith.constant 0 : i32
    return %c0_i32, %c0_i32_0 : i32, i32
  }
  func.func @transform_3(%arg0: i32) -> (i32, i32, i32) {
    %c0_i32 = arith.constant 0 : i32
    %c0_i32_0 = arith.constant 0 : i32
    %c0_i32_1 = arith.constant 0 : i32
    return %c0_i32, %arg0, %c0_i32_0 : i32, i32, i32
  }
  func.func @transform_4(%arg0: i32) -> (i32, i32) {
    %c0_i32 = arith.constant 0 : i32
    %c0_i32_0 = arith.constant 0 : i32
    return %arg0, %c0_i32 : i32, i32
  }
  func.func @transform_5(%arg0: i32) -> (i32, i32) {
    %c0_i32 = arith.constant 0 : i32
    %c0_i32_0 = arith.constant 0 : i32
    return %arg0, %c0_i32 : i32, i32
  }
}

</mosaic_0001>

<bundles_post_ra>
// kernel: tpu_custom_call.1
= control target key start
LH: loop header
LB: loop body
LE: loop exit
PB: predicated region body
PF: predicated region fallthrough
CT: control target
= control target key end

     0   :  { %11 = vsyncpa [#allocation3], 0  ;;  %s294_s0 = inlined_call_operand.hbm [shape: f32[2,4,256], index: 0, kind: input, shape index: {}]   ;;  %s295_s1 = inlined_call_operand.vmem [shape: f32[4,1], index: 1, kind: input, shape index: {}]   ;;  %s296_s2 = inlined_call_operand.vmem [shape: f32[4,1], index: 2, kind: input, shape index: {}]   ;;  %s297_s3 = inlined_call_operand.hbm [shape: f32[2,4,256], index: 3, kind: output, shape index: {0}]   ;;  %s298_s4 = inlined_call_operand.vmem [shape: f32[4,1], index: 4, kind: output, shape index: {1}]   ;;  %s299_s5 = inlined_call_operand.vmem [shape: f32[4,1], index: 5, kind: output, shape index: {2}]  }
   0x1   :  { %12 = vsyncpa [#allocation4], 0  ;;  %s204_s18 = smov [#allocation2]   ;;  %s156_s22 = scalar_lea.hbm %s294_s0, 256 }
   0x2   :  { %s18_s19 = sshll.u32 %s204_s18, 4  ;;  %p157_p0 = scmp.ne.s32.totalorder %s294_s0, %s156_s22  ;;  %s19_s19 = int_to_ptr.vmem [resolvable:$true] %s18_s19 }
   0x3   :  { %p160_p1 = scmp.lt.u32.totalorder %s156_s22, %s294_s0 }
   0x5   :  { %p162_p2 = pnand %p160_p1, %p157_p0 }
   0x7   :  { %165 = shalt.err (!%p162_p2)
}
   0x8   :  { %s166_s27 = scalar_lea.vmem %s19_s19, 256  ;;  %p171_p4 = scmp.lt.s32.totalorder %s19_s19, %s19_s19 }
   0x9   :  { %p167_p3 = scmp.ne.s32.totalorder %s19_s19, %s166_s27  ;;  %p172_p5 = scmp.lt.s32.totalorder %s166_s27, %s166_s27 }
   0xb   :  { %p173_p6 = por %p172_p5, %p171_p4 }
   0xd   :  { %p174_p7 = pnand %p173_p6, %p167_p3 }
   0xf   :  { %177 = shalt.err (!%p174_p7)
}
  0x10   :  { %s205_s28 = smov 128   ;;  %s206_s29 = smov 8  }
  0x11   :  { %24 = dma.hbm_to_vmem [thread:$0]  %s294_s0, 256, %s19_s19, [#allocation3], %s205_s28, %s205_s28, %s206_s29  }
  0x12   :  { %200 = dma.done.wait [#allocation3], 256  }
  0x13   :  { %201 = vsyncadd [#allocation3], 4294967040  ;;  %vm45_vm0 = vcmask 1043456   ;;  %v37_v0 = vld [vmem:[#allocation2] sm:$0xff]  ;;  %v38_v1 = vld [vmem:[#allocation2 + $0x8] sm:$0xff]  ;;  %v207_v26 = vmov 0   ;;  %v93_v43 = vlaneseq }
  0x14   :  { %v41_v2 = vcombine.high %v37_v0, %v37_v0  ;;  %v42_v3 = vcombine.high %v38_v1, %v38_v1  ;;  %v46_v4 = vsel %vm45_vm0, %v37_v0, 0.0  ;;  %v47_v5 = vsel %vm45_vm0, %v38_v1, 0.0  ;;  %150 = vset.pattern.permute.xlu1 %v207_v26  ;;  %151 = vset.pattern.permute.xlu0 %v207_v26  ;;  %v34_v35 = vld [vmem:[%s295_s1] sm:$0xf]  ;;  %s209_s1 = smov [#allocation5]  }
  0x15   :  { %v48_v6 = vadd.f32 %v47_v5, %v46_v4  ;;  %v57_v7 = vmul.f32 %v37_v0, %v37_v0  ;;  %v58_v8 = vmul.f32 %v38_v1, %v38_v1  ;;  %vm116_vm1 = vcmask 3072   ;;  %v36_v38 = vld [vmem:[%s296_s2] sm:$0xf] }
  0x16   :  { %v49_v9 = vsel %vm45_vm0, %v41_v2, 0.0  ;;  %v50_v10 = vsel %vm45_vm0, %v42_v3, 0.0  ;;  %v208_v41 = vmov 839922192   ;;  %v94_v45 = vshrl.u32 %v93_v43, 7 }
  0x17   :  { %v51_v11 = vadd.f32 %v50_v10, %v49_v9  ;;  %v52_v12 = vsel %vm45_vm0, %v48_v6, 0.0  ;;  %v61_v13 = vcombine.high %v57_v7, %v57_v7  ;;  %v62_v14 = vcombine.high %v58_v8, %v58_v8 }
  0x18   :  { %v65_v15 = vsel %vm45_vm0, %v57_v7, 0.0  ;;  %v66_v16 = vsel %vm45_vm0, %v58_v8, 0.0  ;;  %v91_v42 = vunpack.c.l.s4 %v208_v41 }
  0x19   :  { %v53_v17 = vsel %vm45_vm0, %v51_v11, 0.0  ;;  %v67_v18 = vadd.f32 %v66_v16, %v65_v15  ;;  %v68_v19 = vsel %vm45_vm0, %v61_v13, 0.0  ;;  %v69_v20 = vsel %vm45_vm0, %v62_v14, 0.0 }
  0x1a   :  { %v54_v21 = vadd.f32 %v53_v17, %v52_v12  ;;  %v70_v22 = vadd.f32 %v69_v20, %v68_v19  ;;  %v92_v44 = vunpack.c.0.s8 %v91_v42 }
  0x1b   :  { %v71_v23 = vsel %vm45_vm0, %v67_v18, 0.0 }
  0x1c   :  { %55 = vadd.xlane.f32.xlu0 %v54_v21  ;;  %v72_v24 = vsel %vm45_vm0, %v70_v22, 0.0  ;;  %v95_v46 = vsub.s32 %v92_v44, %v94_v45 }
  0x1d   :  { %v73_v25 = vadd.f32 %v72_v24, %v71_v23 }
  0x20   :  { %74 = vadd.xlane.f32.xlu0 %v73_v25 }
  0xa9   :  { %v56_v27 = vpop.xlane.xlu0 %55 }
  0xaa   :  { %v76_v28 = vmul.f32 0.001953125, %v56_v27 }
  0xac   :  { %117 = vst.msk [vmem:[%s298_s4] sm:$0xf] %vm116_vm1, %v76_v28  ;;  %v78_v30 = vmul.f32 %v76_v28, %v76_v28  ;;  %s124_s4 = sshll.u32 %s209_s1, 4  ;;  %s125_s4 = int_to_ptr.vmem [resolvable:$true] %s124_s4 }
  0xad   :  { %v75_v29 = vpop.xlane.xlu0 %74  ;;  %s178_s2 = scalar_lea.vmem %s125_s4, 256  ;;  %p183_p9 = scmp.lt.s32.totalorder %s125_s4, %s125_s4 }
  0xae   :  { %v77_v31 = vmul.f32 0.001953125, %v75_v29  ;;  %p179_p8 = scmp.ne.s32.totalorder %s125_s4, %s178_s2  ;;  %p184_p10 = scmp.lt.s32.totalorder %s178_s2, %s178_s2 }
  0xb0   :  { %v79_v32 = vsub.f32 %v77_v31, %v78_v30  ;;  %p185_p11 = por %p184_p10, %p183_p9 }
  0xb2   :  { %v80_v33 = vmax.f32 %v79_v32, 0.0  ;;  %p186_p12 = pnand %p185_p11, %p179_p8 }
  0xb4   :  { %v81_v34 = vadd.f32 1e-05, %v80_v33  ;;  %118 = vst.msk [vmem:[%s299_s5] sm:$0xf] %vm116_vm1, %v80_v33 }
  0xb6   :  { %154 = vrsqrt.f32 %v81_v34 }
  0xc0   :  { %v155_v36 = vpop.eup %154 }
  0xc1   :  { %v83_v37 = vmul.f32 %v155_v36, %v34_v35 }
  0xc3   :  { %88 = vperm.xlu1 %150, %v83_v37   ;;  %v84_v39 = vmul.f32 %v83_v37, %v76_v28 }
  0xc5   :  { %v85_v40 = vsub.f32 %v36_v38, %v84_v39 }
  0xc7   :  { %102 = vperm.xlu1 %150, %v85_v40  }
 0x142   :  { %v89_v47 = vpop.permute.xlu1 %88 }
 0x143   :  { %v96_v48 = vrot.slane %v89_v47, %v95_v46 }
 0x145   :  { %v98_v50 = vmul.f32 %v96_v48, %v37_v0  ;;  %v99_v51 = vmul.f32 %v96_v48, %v38_v1 }
 0x146   :  { %v103_v49 = vpop.permute.xlu1 %102 }
 0x147   :  { %v110_v52 = vrot.slane %v103_v49, %v95_v46 }
 0x149   :  { %v112_v53 = vadd.f32 %v110_v52, %v98_v50  ;;  %v113_v54 = vadd.f32 %v110_v52, %v99_v51 }
 0x14b   :  { %114 = vst [vmem:[#allocation5] sm:$0xff] %v112_v53  ;;  %115 = vst [vmem:[#allocation5 + $0x8] sm:$0xff] %v113_v54 }
 0x14c   :  { %189 = shalt.err (!%p186_p12)
}
 0x14d   :  { %s190_s15 = scalar_lea.hbm %s297_s3, 256 }
 0x14e   :  { %p191_p13 = scmp.ne.s32.totalorder %s297_s3, %s190_s15  ;;  %p194_p0 = scmp.lt.u32.totalorder %s190_s15, %s297_s3 }
 0x150   :  { %p196_p1 = pnand %p194_p0, %p191_p13 }
 0x152   :  { %199 = shalt.err (!%p196_p1)
}
 0x153   :  { %130 = dma.vmem_to_hbm [thread:$0]  %s125_s4, 256, %s297_s3, [#allocation4], %s205_s28, %s205_s28, %s206_s29  }
 0x154   :  { %202 = dma.done.wait [#allocation4], 256  }
 0x155   :  { %203 = vsyncadd [#allocation4], 4294967040 }
 0x156   :  { %142 = vsyncpa [#allocation3], 1 }
 0x157   :  { %143 = vsyncpa [#allocation4], 1 }

</bundles_post_ra>
